<compile_context>
chip_gen: v6e
topology: v6e:2x2x1
jax: 0.10.0
libtpu: 0.0.40
codegen_flags: <defaults>
</compile_context>

<pallas_src>
import functools

import jax
import jax.numpy as jnp
import numpy as np
from jax.experimental import pallas as pl
from jax.experimental.pallas import tpu as pltpu


# ----------------------------- Pallas kernels ------------------------------

def _stats_kernel(x_ref, w_ref, stat_ref, *, inv_tile):
    # x_ref: (1, Cin, tS)   w_ref: (Ncol, Cin)   stat_ref: (1, 1, Ncol, 2)
    x = x_ref[0]                                                        # (Cin, tS)
    conv = jnp.dot(w_ref[...], x, preferred_element_type=jnp.float32)   # (Ncol, tS)
    col_sum = jnp.sum(conv, axis=1, keepdims=True)                      # (Ncol, 1)
    d = conv - col_sum * inv_tile                                       # center at tile mean
    col_m2 = jnp.sum(d * d, axis=1, keepdims=True)                      # (Ncol, 1)
    stat_ref[0, 0, :, 0:1] = col_sum
    stat_ref[0, 0, :, 1:2] = col_m2


def _fused_deconv_bn_lrelu_kernel(x_ref, w_ref, scale_ref, shift_ref, o_ref, *, neg_slope):
    # x_ref: (1, Cin, tS)   w_ref: (Ncol, Cin)   scale/shift: (Ncol, 1)   o_ref: (1, Ncol, tS)
    x = x_ref[0]                                                        # (Cin, tS)
    conv = jnp.dot(w_ref[...], x, preferred_element_type=jnp.float32)   # (Ncol, tS)
    y = conv * scale_ref[...] + shift_ref[...]                          # bias+BN folded in
    o_ref[0] = jnp.where(y >= 0, y, neg_slope * y).astype(o_ref.dtype)


def _pick_spatial_tile(s, cap=4096):
    for t in (4096, 2048, 1024, 512, 256, 128):
        if t <= cap and s % t == 0:
            return t
    return s  # full-extent fallback (legal: equals the full array dim)


# ------------------------------ module wrapper ------------------------------

def conv_transpose_block(x, weight, bias, gamma, beta, *, eps=1e-5, neg_slope=0.01):
    """Forward of the PyTorch ConvTranspose module (conv_t -> BN(train) -> LeakyReLU).

    x:      (N, Cin, D, H, W)       float32, NCDHW
    weight: (Cin, Cout, 2, 2, 2)    float32 (PyTorch ConvTranspose3d layout)
    bias:   (Cout,), gamma: (Cout,), beta: (Cout,)
    returns (N, Cout, 2D, 2H, 2W)
    """
    N, Cin, D, H, W = x.shape
    Cin_w, Cout, kd, kh, kw = weight.shape
    assert Cin_w == Cin and (kd, kh, kw) == (2, 2, 2)
    K = kd * kh * kw                    # 8
    Ncol = Cout * K
    S = D * H * W

    # free reshapes / tiny host ops (no big-tensor transposes)
    x3 = x.reshape(N, Cin, S)           # (N, Cin, S): Cin on sublanes, spatial on lanes
    w_t = weight.reshape(Cin, Ncol).T   # (Ncol, Cin), tiny

    tS = _pick_spatial_tile(S)
    nS = S // tS
    grid = (N, nS)
    cparams = pltpu.CompilerParams(
        dimension_semantics=("parallel", "parallel"),
        vmem_limit_bytes=32 * 1024 * 1024)

    # --- pass 1: per-tile, per-column sums + centered sum-of-squares (conv w/o bias) ---
    stats = pl.pallas_call(
        functools.partial(_stats_kernel, inv_tile=1.0 / tS),
        out_shape=jax.ShapeDtypeStruct((N, nS, Ncol, 2), jnp.float32),
        grid=grid,
        in_specs=[
            pl.BlockSpec((1, Cin, tS), lambda n, s: (n, 0, s)),
            pl.BlockSpec((Ncol, Cin), lambda n, s: (0, 0)),
        ],
        out_specs=pl.BlockSpec((1, 1, Ncol, 2), lambda n, s: (n, s, 0, 0)),
        compiler_params=cparams,
    )(x3, w_t)

    # --- tiny JAX glue: Chan parallel-variance combine -> per-channel batch stats ---
    col_sum_t = stats[..., 0]                       # (N, nS, Ncol)
    col_m2_t = stats[..., 1]                        # (N, nS, Ncol)
    cnt_col = N * nS * tS                           # elements per column (== N * S)
    col_mean = jnp.sum(col_sum_t, axis=(0, 1)) / cnt_col                 # (Ncol,)
    col_mean_t = col_sum_t / tS
    col_m2 = (jnp.sum(col_m2_t, axis=(0, 1))
              + tS * jnp.sum((col_mean_t - col_mean) ** 2, axis=(0, 1)))  # (Ncol,)
    cm = col_mean.reshape(Cout, K)
    ch_mean_nb = jnp.mean(cm, axis=1)               # channel mean of conv WITHOUT bias
    ch_m2 = (col_m2.reshape(Cout, K).sum(axis=1)
             + cnt_col * jnp.sum((cm - ch_mean_nb[:, None]) ** 2, axis=1))
    ch_var = ch_m2 / (K * cnt_col)                  # biased batch variance (bias-invariant)
    ch_mean = ch_mean_nb + bias                     # batch mean of conv + bias
    scale_ch = gamma / jnp.sqrt(ch_var + eps)
    shift_ch = beta + scale_ch * (bias - ch_mean)   # folds conv bias + BN shift
    scale_col = jnp.repeat(scale_ch, K).reshape(Ncol, 1)
    shift_col = jnp.repeat(shift_ch, K).reshape(Ncol, 1)

    # --- pass 2: recompute matmul, fused BN affine + LeakyReLU, one lane-dense write ---
    out_ld = pl.pallas_call(
        functools.partial(_fused_deconv_bn_lrelu_kernel, neg_slope=neg_slope),
        out_shape=jax.ShapeDtypeStruct((N, Ncol, S), jnp.float32),
        grid=grid,
        in_specs=[
            pl.BlockSpec((1, Cin, tS), lambda n, s: (n, 0, s)),
            pl.BlockSpec((Ncol, Cin), lambda n, s: (0, 0)),
            pl.BlockSpec((Ncol, 1), lambda n, s: (0, 0)),
            pl.BlockSpec((Ncol, 1), lambda n, s: (0, 0)),
        ],
        out_specs=pl.BlockSpec((1, Ncol, tS), lambda n, s: (n, 0, s)),
        compiler_params=cparams,
    )(x3, w_t, scale_col, shift_col)

    # --- glue: (N, Cout*8, S) -> (N, Cout, 2D, 2H, 2W): single XLA transpose pass ---
    out = out_ld.reshape(N, Cout, 2, 2, 2, D, H, W)      # (n, co, kd, kh, kw, d, h, w)
    out = jnp.transpose(out, (0, 1, 5, 2, 6, 3, 7, 4))   # (n, co, d, kd, h, kh, w, kw)
    return out.reshape(N, Cout, 2 * D, 2 * H, 2 * W)


# ------------------------------ pure-JAX reference ------------------------------

def reference(x, weight, bias, gamma, beta, eps=1e-5, neg_slope=0.01):
    N, Cin, D, H, W = x.shape
    _, Cout, kd, kh, kw = weight.shape
    conv = jnp.einsum('ncdhw,coijk->nodihjwk', x, weight)
    conv = conv.reshape(N, Cout, D * kd, H * kh, W * kw)
    conv = conv + bias[None, :, None, None, None]
    mean = jnp.mean(conv, axis=(0, 2, 3, 4), keepdims=True)
    var = jnp.mean((conv - mean) ** 2, axis=(0, 2, 3, 4), keepdims=True)  # biased
    xn = (conv - mean) / jnp.sqrt(var + eps)
    y = xn * gamma[None, :, None, None, None] + beta[None, :, None, None, None]
    return jnp.where(y >= 0, y, neg_slope * y)


# ------------------------------------ main ------------------------------------

if __name__ == "__main__":
    key = jax.random.PRNGKey(0)
    k1, k2, k3 = jax.random.split(key, 3)

    # small shapes consistent with the module
    N, Cin, Cout = 2, 4, 8
    D = H = W = 8

    x = jax.random.normal(k1, (N, Cin, D, H, W), dtype=jnp.float32)
    weight = 0.1 * jax.random.normal(k2, (Cin, Cout, 2, 2, 2), dtype=jnp.float32)
    bias = 0.1 * jax.random.normal(k3, (Cout,), dtype=jnp.float32)
    gamma = jnp.ones((Cout,), dtype=jnp.float32)   # BatchNorm3d default weight
    beta = jnp.zeros((Cout,), dtype=jnp.float32)   # BatchNorm3d default bias

    out = jax.jit(conv_transpose_block)(x, weight, bias, gamma, beta)
    out = jax.block_until_ready(out)

    ref = reference(x, weight, bias, gamma, beta)
    assert out.shape == (N, Cout, 2 * D, 2 * H, 2 * W), out.shape
    np.testing.assert_allclose(np.asarray(out), np.asarray(ref),
                               rtol=1e-4, atol=1e-4)
    print("KERNEL_OK")
</pallas_src>

<mosaic_0001>
module attributes {stable_mosaic.version = 11 : i64} {
  func.func @_stats_kernel(%arg0: i32, %arg1: i32, %arg2: memref<1x4x512xf32, #tpu.memory_space<vmem>>, %arg3: memref<64x4xf32, #tpu.memory_space<vmem>>, %arg4: memref<1x1x64x2xf32, #tpu.memory_space<vmem>>) attributes {dimension_semantics = [#tpu.dimension_semantics<parallel>, #tpu.dimension_semantics<parallel>], iteration_bounds = array<i64: 2, 1>, scalar_prefetch = 0 : i64, scratch_operands = 0 : i64, tpu.core_type = #tpu.core_type<tc>, window_params = [{transform_indices = @transform_0, window_bounds = array<i64: 1, 4, 512>}, {pipeline_mode = #tpu.pipeline_mode<synchronous>, transform_indices = @transform_1, window_bounds = array<i64: 64, 4>}, {transform_indices = @transform_2, window_bounds = array<i64: 1, 1, 64, 2>}]} {
    %c0 = arith.constant 0 : index
    %c0_0 = arith.constant 0 : index
    %c0_1 = arith.constant 0 : index
    %0 = vector.load %arg2[%c0, %c0_0, %c0_1] : memref<1x4x512xf32, #tpu.memory_space<vmem>>, vector<1x4x512xf32>
    %1 = vector.shape_cast %0 : vector<1x4x512xf32> to vector<4x512xf32>
    %c0_2 = arith.constant 0 : index
    %c0_3 = arith.constant 0 : index
    %2 = vector.load %arg3[%c0_2, %c0_3] : memref<64x4xf32, #tpu.memory_space<vmem>>, vector<64x4xf32>
    %cst = arith.constant dense<0.000000e+00> : vector<64x512xf32>
    %3 = tpu.matmul %2, %1, %cst {dimension_numbers = #tpu.dot_dimension_numbers<[1], [0], [0], [1], [0, 0, 1, 1], [], []>} : vector<64x4xf32>, vector<4x512xf32>, vector<64x512xf32> -> vector<64x512xf32>
    %cst_4 = arith.constant dense<0.000000e+00> : vector<64xf32>
    %4 = vector.multi_reduction <add>, %3, %cst_4 [1] : vector<64x512xf32> to vector<64xf32>
    %5 = vector.shape_cast %4 : vector<64xf32> to vector<64x1xf32>
    %cst_5 = arith.constant 0.001953125 : f32
    %6 = vector.broadcast %cst_5 : f32 to vector<64x1xf32>
    %7 = arith.mulf %5, %6 : vector<64x1xf32>
    %8 = vector.broadcast %7 : vector<64x1xf32> to vector<64x512xf32>
    %9 = arith.subf %3, %8 : vector<64x512xf32>
    %10 = arith.mulf %9, %9 : vector<64x512xf32>
    %cst_6 = arith.constant dense<0.000000e+00> : vector<64xf32>
    %11 = vector.multi_reduction <add>, %10, %cst_6 [1] : vector<64x512xf32> to vector<64xf32>
    %12 = vector.shape_cast %11 : vector<64xf32> to vector<64x1xf32>
    %c0_7 = arith.constant 0 : index
    %c0_8 = arith.constant 0 : index
    %c0_9 = arith.constant 0 : index
    %c0_10 = arith.constant 0 : index
    %13 = vector.load %arg4[%c0_7, %c0_8, %c0_9, %c0_10] : memref<1x1x64x2xf32, #tpu.memory_space<vmem>>, vector<1x1x64x1xf32>
    %14 = vector.shape_cast %13 : vector<1x1x64x1xf32> to vector<64x1xf32>
    %15 = vector.shape_cast %5 : vector<64x1xf32> to vector<1x1x64x1xf32>
    tpu.vector_store %arg4[%c0_7, %c0_8, %c0_9, %c0_10], %15 {strides = array<i32>} : memref<1x1x64x2xf32, #tpu.memory_space<vmem>>, vector<1x1x64x1xf32>,
    %c0_11 = arith.constant 0 : index
    %c0_12 = arith.constant 0 : index
    %c0_13 = arith.constant 0 : index
    %c1 = arith.constant 1 : index
    %16 = vector.load %arg4[%c0_11, %c0_12, %c0_13, %c1] : memref<1x1x64x2xf32, #tpu.memory_space<vmem>>, vector<1x1x64x1xf32>
    %17 = vector.shape_cast %16 : vector<1x1x64x1xf32> to vector<64x1xf32>
    %18 = vector.shape_cast %12 : vector<64x1xf32> to vector<1x1x64x1xf32>
    tpu.vector_store %arg4[%c0_11, %c0_12, %c0_13, %c1], %18 {strides = array<i32>} : memref<1x1x64x2xf32, #tpu.memory_space<vmem>>, vector<1x1x64x1xf32>,
    return
  }
  func.func @transform_0(%arg0: i32, %arg1: i32) -> (i32, i32, i32) {
    %c0_i32 = arith.constant 0 : i32
    %c0_i32_0 = arith.constant 0 : i32
    return %arg0, %c0_i32, %arg1 : i32, i32, i32
  }
  func.func @transform_1(%arg0: i32, %arg1: i32) -> (i32, i32) {
    %c0_i32 = arith.constant 0 : i32
    %c0_i32_0 = arith.constant 0 : i32
    %c0_i32_1 = arith.constant 0 : i32
    return %c0_i32, %c0_i32_0 : i32, i32
  }
  func.func @transform_2(%arg0: i32, %arg1: i32) -> (i32, i32, i32, i32) {
    %c0_i32 = arith.constant 0 : i32
    %c0_i32_0 = arith.constant 0 : i32
    %c0_i32_1 = arith.constant 0 : i32
    return %arg0, %arg1, %c0_i32, %c0_i32_0 : i32, i32, i32, i32
  }
}

module attributes {stable_mosaic.version = 11 : i64} {
  func.func @_fused_deconv_bn_lrelu_kernel(%arg0: i32, %arg1: i32, %arg2: memref<1x4x512xf32, #tpu.memory_space<vmem>>, %arg3: memref<64x4xf32, #tpu.memory_space<vmem>>, %arg4: memref<64x1xf32, #tpu.memory_space<vmem>>, %arg5: memref<64x1xf32, #tpu.memory_space<vmem>>, %arg6: memref<1x64x512xf32, #tpu.memory_space<vmem>>) attributes {dimension_semantics = [#tpu.dimension_semantics<parallel>, #tpu.dimension_semantics<parallel>], iteration_bounds = array<i64: 2, 1>, scalar_prefetch = 0 : i64, scratch_operands = 0 : i64, tpu.core_type = #tpu.core_type<tc>, window_params = [{transform_indices = @transform_0, window_bounds = array<i64: 1, 4, 512>}, {pipeline_mode = #tpu.pipeline_mode<synchronous>, transform_indices = @transform_1, window_bounds = array<i64: 64, 4>}, {pipeline_mode = #tpu.pipeline_mode<synchronous>, transform_indices = @transform_2, window_bounds = array<i64: 64, 1>}, {pipeline_mode = #tpu.pipeline_mode<synchronous>, transform_indices = @transform_3, window_bounds = array<i64: 64, 1>}, {transform_indices = @transform_4, window_bounds = array<i64: 1, 64, 512>}]} {
    %c0 = arith.constant 0 : index
    %c0_0 = arith.constant 0 : index
    %c0_1 = arith.constant 0 : index
    %0 = vector.load %arg2[%c0, %c0_0, %c0_1] : memref<1x4x512xf32, #tpu.memory_space<vmem>>, vector<1x4x512xf32>
    %1 = vector.shape_cast %0 : vector<1x4x512xf32> to vector<4x512xf32>
    %c0_2 = arith.constant 0 : index
    %c0_3 = arith.constant 0 : index
    %2 = vector.load %arg3[%c0_2, %c0_3] : memref<64x4xf32, #tpu.memory_space<vmem>>, vector<64x4xf32>
    %cst = arith.constant dense<0.000000e+00> : vector<64x512xf32>
    %3 = tpu.matmul %2, %1, %cst {dimension_numbers = #tpu.dot_dimension_numbers<[1], [0], [0], [1], [0, 0, 1, 1], [], []>} : vector<64x4xf32>, vector<4x512xf32>, vector<64x512xf32> -> vector<64x512xf32>
    %c0_4 = arith.constant 0 : index
    %c0_5 = arith.constant 0 : index
    %4 = vector.load %arg4[%c0_4, %c0_5] : memref<64x1xf32, #tpu.memory_space<vmem>>, vector<64x1xf32>
    %5 = vector.broadcast %4 : vector<64x1xf32> to vector<64x512xf32>
    %6 = arith.mulf %3, %5 : vector<64x512xf32>
    %c0_6 = arith.constant 0 : index
    %c0_7 = arith.constant 0 : index
    %7 = vector.load %arg5[%c0_6, %c0_7] : memref<64x1xf32, #tpu.memory_space<vmem>>, vector<64x1xf32>
    %8 = vector.broadcast %7 : vector<64x1xf32> to vector<64x512xf32>
    %9 = arith.addf %6, %8 : vector<64x512xf32>
    %cst_8 = arith.constant 0.000000e+00 : f32
    %10 = vector.broadcast %cst_8 : f32 to vector<64x512xf32>
    %11 = arith.cmpf oge, %9, %10 : vector<64x512xf32>
    %cst_9 = arith.constant 0.00999999977 : f32
    %12 = vector.broadcast %cst_9 : f32 to vector<64x512xf32>
    %13 = arith.mulf %12, %9 : vector<64x512xf32>
    %14 = arith.select %11, %9, %13 : vector<64x512xi1>, vector<64x512xf32>
    %c0_10 = arith.constant 0 : index
    %c0_11 = arith.constant 0 : index
    %c0_12 = arith.constant 0 : index
    %15 = vector.load %arg6[%c0_10, %c0_11, %c0_12] : memref<1x64x512xf32, #tpu.memory_space<vmem>>, vector<1x64x512xf32>
    %16 = vector.shape_cast %15 : vector<1x64x512xf32> to vector<64x512xf32>
    %17 = vector.shape_cast %14 : vector<64x512xf32> to vector<1x64x512xf32>
    tpu.vector_store %arg6[%c0_10, %c0_11, %c0_12], %17 {strides = array<i32>} : memref<1x64x512xf32, #tpu.memory_space<vmem>>, vector<1x64x512xf32>,
    return
  }
  func.func @transform_0(%arg0: i32, %arg1: i32) -> (i32, i32, i32) {
    %c0_i32 = arith.constant 0 : i32
    %c0_i32_0 = arith.constant 0 : i32
    return %arg0, %c0_i32, %arg1 : i32, i32, i32
  }
  func.func @transform_1(%arg0: i32, %arg1: i32) -> (i32, i32) {
    %c0_i32 = arith.constant 0 : i32
    %c0_i32_0 = arith.constant 0 : i32
    %c0_i32_1 = arith.constant 0 : i32
    return %c0_i32, %c0_i32_0 : i32, i32
  }
  func.func @transform_2(%arg0: i32, %arg1: i32) -> (i32, i32) {
    %c0_i32 = arith.constant 0 : i32
    %c0_i32_0 = arith.constant 0 : i32
    %c0_i32_1 = arith.constant 0 : i32
    return %c0_i32, %c0_i32_0 : i32, i32
  }
  func.func @transform_3(%arg0: i32, %arg1: i32) -> (i32, i32) {
    %c0_i32 = arith.constant 0 : i32
    %c0_i32_0 = arith.constant 0 : i32
    %c0_i32_1 = arith.constant 0 : i32
    return %c0_i32, %c0_i32_0 : i32, i32
  }
  func.func @transform_4(%arg0: i32, %arg1: i32) -> (i32, i32, i32) {
    %c0_i32 = arith.constant 0 : i32
    %c0_i32_0 = arith.constant 0 : i32
    return %arg0, %c0_i32, %arg1 : i32, i32, i32
  }
}

</mosaic_0001>

<bundles_post_ra>
// kernel: conv_transpose_block.2
= control target key start
LH: loop header
LB: loop body
LE: loop exit
PB: predicated region body
PF: predicated region fallthrough
CT: control target
= control target key end

     0   :  { %s815_s9 = smov 0   ;;  %s817_s10 = smov 0   ;;  %s1054_s0 = inlined_call_operand.vmem [shape: f32[2,4,512], index: 0, kind: input, shape index: {}]   ;;  %s1055_s1 = inlined_call_operand.vmem [shape: f32[64,4], index: 1, kind: input, shape index: {}]   ;;  %s1056_s2 = inlined_call_operand.vmem [shape: f32[2,1,64,2], index: 2, kind: output, shape index: {}]  }
   0x1   :  { %s819_s11 = smov 0  }
   0x2 LB: > { %s24_s12 = sadd.s32 1, %s793_s10  ;;  %p719_p0 = scmp.ge.s32.totalorder %s797_s11, 1  ;;  %s797_s11 = sphi %s819_s11, %s12_s11   ;;  %s793_s10 = sphi %s817_s10, %s1058_s10   ;;  %s789_s9 = sphi %s815_s9, %s1057_s9  }
   0x3   : > { %p26_p1 = scmp.ge.s32.totalorder %s24_s12, 2  ;;  %p133_p2 = scmp.lt.s32.totalorder %s797_s11, 3 }
   0x5   : > { %s1060_s12 = smov (%p26_p1, %s24_s12), 0  ;;  %p134_p3 = pnand %p719_p0, %p133_p2 }
   0x6   : > { %p164_p4 = scmp.lt.s32.totalorder (!%p134_p3), %s789_s9, 1 }
   0x7   : > { %137 = sbr.rel (%p134_p3) target bundleno = 538 (0x21a), region = 28 }
   0xc   : > { %v799_v0 = vmov 0.0   ;;  %s1062_s9 = smov (!%p164_p4, %s789_s9), 1  ;;  %vm221_vm0 = vcmask 1043456   ;;  %v184_v5 = vld [vmem:[%s1055_s1] sm:$0xff]  ;;  %vm196_vm1 = vcmask 31744   ;;  %v185_v6 = vld [vmem:[%s1055_s1 + $0x8] sm:$0xff] }
   0xd   : > { %294 = vmatprep.mubr.f32.mxu0 %v799_v0  ;;  %407 = vmatprep.mubr.f32.mxu1 %v799_v0  ;;  %s746_s13 = sshll.u32 %s1062_s9, 4  ;;  %v186_v7 = vld [vmem:[%s1055_s1 + $0x10] sm:$0xff]  ;;  %v187_v8 = vld [vmem:[%s1055_s1 + $0x18] sm:$0xff]  ;;  %v188_v9 = vld [vmem:[%s1055_s1 + $0x20] sm:$0xff]  ;;  %s747_s5 = sshll.u32 %s1062_s9, 6  ;;  %vm608_vm2 = vcmask 7168  }
   0xe   : > { %s171_s16 = scalar_lea.vmem %s1054_s0, %s746_s13  ;;  %v189_v10 = vld [vmem:[%s1055_s1 + $0x28] sm:$0xff]  ;;  %v190_v11 = vld [vmem:[%s1055_s1 + $0x30] sm:$0xff]  ;;  %v191_v12 = vld [vmem:[%s1055_s1 + $0x38] sm:$0xff]  ;;  %s979_s8 = scalar_lea.vmem %s1056_s2, %s747_s5  ;;  %vm617_vm3 = vcmask 15368  }
   0xf   : > { %v182_v1 = vld [vmem:[%s171_s16] sm:$0xff]  ;;  %v183_v2 = vld [vmem:[%s171_s16 + $0x8] sm:$0xff] }
  0x10   : > { %v194_v3 = vcombine.high %v182_v1, %v182_v1  ;;  %v195_v4 = vcombine.high %v183_v2, %v183_v2 }
  0x12   : > { %724 = vmatprep.subr.msk.mxu0 %vm221_vm0, %v194_v3  ;;  %734 = vmatprep.subr.msk.mxu1 %vm221_vm0, %v195_v4 }
  0x13   : > { %725 = vmatpush1.msk.msra.mxu0 %vm221_vm0, %v182_v1  ;;  %735 = vmatpush1.msk.msra.mxu1 %vm221_vm0, %v183_v2 }
  0x14   : > { %726 = vmatmul.mubr.msk.f32.vlgmr.msra.gmra.mxu0 %vm196_vm1, %v184_v5  ;;  %736 = vmatmul.mubr.msk.f32.vlgmr.msra.gmra.mxu1 %vm196_vm1, %v184_v5 }
  0x15   : > { %300 = vmatprep.mubr.f32.mxu0 %v799_v0  ;;  %413 = vmatprep.mubr.f32.mxu1 %v799_v0 }
  0x18   : > { %727 = vmatmul.mubr.msk.f32.gmra.mxu0 %vm196_vm1, %v185_v6  ;;  %737 = vmatmul.mubr.msk.f32.gmra.mxu1 %vm196_vm1, %v185_v6 }
  0x19   : > { %306 = vmatprep.mubr.f32.mxu0 %v799_v0  ;;  %419 = vmatprep.mubr.f32.mxu1 %v799_v0 }
  0x1c   : > { %728 = vmatmul.mubr.msk.f32.gmra.mxu0 %vm196_vm1, %v186_v7  ;;  %738 = vmatmul.mubr.msk.f32.gmra.mxu1 %vm196_vm1, %v186_v7 }
  0x1d   : > { %312 = vmatprep.mubr.f32.mxu0 %v799_v0  ;;  %425 = vmatprep.mubr.f32.mxu1 %v799_v0 }
  0x20   : > { %729 = vmatmul.mubr.msk.f32.gmra.mxu0 %vm196_vm1, %v187_v8  ;;  %739 = vmatmul.mubr.msk.f32.gmra.mxu1 %vm196_vm1, %v187_v8 }
  0x21   : > { %318 = vmatprep.mubr.f32.mxu0 %v799_v0  ;;  %431 = vmatprep.mubr.f32.mxu1 %v799_v0 }
  0x24   : > { %730 = vmatmul.mubr.msk.f32.gmra.mxu0 %vm196_vm1, %v188_v9  ;;  %740 = vmatmul.mubr.msk.f32.gmra.mxu1 %vm196_vm1, %v188_v9 }
  0x25   : > { %324 = vmatprep.mubr.f32.mxu0 %v799_v0  ;;  %437 = vmatprep.mubr.f32.mxu1 %v799_v0 }
  0x28   : > { %731 = vmatmul.mubr.msk.f32.gmra.mxu0 %vm196_vm1, %v189_v10  ;;  %741 = vmatmul.mubr.msk.f32.gmra.mxu1 %vm196_vm1, %v189_v10 }
  0x29   : > { %330 = vmatprep.mubr.f32.mxu0 %v799_v0  ;;  %443 = vmatprep.mubr.f32.mxu1 %v799_v0 }
  0x2c   : > { %732 = vmatmul.mubr.msk.f32.gmra.mxu0 %vm196_vm1, %v190_v11  ;;  %742 = vmatmul.mubr.msk.f32.gmra.mxu1 %vm196_vm1, %v190_v11 }
  0x2d   : > { %336 = vmatprep.mubr.f32.mxu0 %v799_v0  ;;  %449 = vmatprep.mubr.f32.mxu1 %v799_v0 }
  0x30   : > { %733 = vmatmul.mubr.msk.f32.gmra.mxu0 %vm196_vm1, %v191_v12  ;;  %743 = vmatmul.mubr.msk.f32.gmra.mxu1 %vm196_vm1, %v191_v12 }
  0xd4   : > { %v879_v13 = vpop.f32.mrf.mxu0  ;;  %v881_v14 = vpop.f32.mrf.mxu1 }
  0xd6   : > { %v883_v15 = vpop.f32.mrf.mxu0  ;;  %v885_v16 = vpop.f32.mrf.mxu1 }
  0xd7   : > { %v456_v17 = vadd.f32 %v883_v15, %v879_v13 }
  0xd8   : > { %v889_v18 = vpop.f32.mrf.mxu0  ;;  %v891_v19 = vpop.f32.mrf.mxu1 }
  0xd9   : > { %v457_v20 = vadd.f32 %v456_v17, %v881_v14 }
  0xda   : > { %v894_v21 = vpop.f32.mrf.mxu0  ;;  %v896_v22 = vpop.f32.mrf.mxu1 }
  0xdb   : > { %v461_v23 = vadd.f32 %v894_v21, %v889_v18  ;;  %v458_v24 = vadd.f32 %v457_v20, %v885_v16 }
  0xdc   : > { %v901_v25 = vpop.f32.mrf.mxu0  ;;  %v903_v26 = vpop.f32.mrf.mxu1 }
  0xdd   : > { %v462_v27 = vadd.f32 %v461_v23, %v891_v19  ;;  %459 = vadd.xlane.f32.xlu0 %v458_v24 }
  0xde   : > { %v906_v28 = vpop.f32.mrf.mxu0  ;;  %v908_v29 = vpop.f32.mrf.mxu1 }
  0xdf   : > { %v466_v30 = vadd.f32 %v906_v28, %v901_v25  ;;  %v463_v31 = vadd.f32 %v462_v27, %v896_v22 }
  0xe0   : > { %v913_v32 = vpop.f32.mrf.mxu0  ;;  %v915_v33 = vpop.f32.mrf.mxu1 }
  0xe1   : > { %v467_v34 = vadd.f32 %v466_v30, %v903_v26  ;;  %464 = vadd.xlane.f32.xlu0 %v463_v31 }
  0xe2   : > { %v918_v35 = vpop.f32.mrf.mxu0  ;;  %v920_v36 = vpop.f32.mrf.mxu1 }
  0xe3   : > { %v471_v37 = vadd.f32 %v918_v35, %v913_v32  ;;  %v468_v38 = vadd.f32 %v467_v34, %v908_v29 }
  0xe4   : > { %v925_v39 = vpop.f32.mrf.mxu0  ;;  %v927_v40 = vpop.f32.mrf.mxu1 }
  0xe5   : > { %v472_v41 = vadd.f32 %v471_v37, %v915_v33  ;;  %469 = vadd.xlane.f32.xlu1 %v468_v38 }
  0xe6   : > { %v930_v42 = vpop.f32.mrf.mxu0  ;;  %v932_v43 = vpop.f32.mrf.mxu1 }
  0xe7   : > { %v476_v44 = vadd.f32 %v930_v42, %v925_v39  ;;  %v473_v45 = vadd.f32 %v472_v41, %v920_v36 }
  0xe8   : > { %v937_v46 = vpop.f32.mrf.mxu0  ;;  %v939_v47 = vpop.f32.mrf.mxu1 }
  0xe9   : > { %v477_v48 = vadd.f32 %v476_v44, %v927_v40  ;;  %474 = vadd.xlane.f32.xlu1 %v473_v45 }
  0xea   : > { %v942_v49 = vpop.f32.mrf.mxu0  ;;  %v944_v50 = vpop.f32.mrf.mxu1 }
  0xeb   : > { %v481_v51 = vadd.f32 %v942_v49, %v937_v46  ;;  %v478_v52 = vadd.f32 %v477_v48, %v932_v43 }
  0xec   : > { %v949_v53 = vpop.f32.mrf.mxu0  ;;  %v951_v54 = vpop.f32.mrf.mxu1 }
  0xed   : > { %v482_v55 = vadd.f32 %v481_v51, %v939_v47  ;;  %479 = vadd.xlane.f32.xlu0 %v478_v52 }
  0xee   : > { %v954_v56 = vpop.f32.mrf.mxu0  ;;  %v956_v57 = vpop.f32.mrf.mxu1 }
  0xef   : > { %v486_v58 = vadd.f32 %v954_v56, %v949_v53  ;;  %v483_v59 = vadd.f32 %v482_v55, %v944_v50 }
  0xf0   : > { %v961_v60 = vpop.f32.mrf.mxu0  ;;  %v966_v63 = vpop.f32.mrf.mxu1 }
  0xf1   : > { %v487_v61 = vadd.f32 %v486_v58, %v951_v54  ;;  %484 = vadd.xlane.f32.xlu1 %v483_v59 }
  0xf2   : > { %v964_v62 = vpop.f32.mrf.mxu0  ;;  %v972_v3 = vpop.f32.mrf.mxu1 }
  0xf3   : > { %v491_v0 = vadd.f32 %v964_v62, %v961_v60  ;;  %v488_v1 = vadd.f32 %v487_v61, %v956_v57 }
  0xf5   : > { %v492_v2 = vadd.f32 %v491_v0, %v966_v63  ;;  %489 = vadd.xlane.f32.xlu0 %v488_v1 }
  0xf7   : > { %v493_v4 = vadd.f32 %v492_v2, %v972_v3 }
  0xf9   : > { %494 = vadd.xlane.f32.xlu1 %v493_v4 }
 0x166   : > { %v460_v5 = vpop.xlane.xlu0 %459 }
 0x167   : > { %v496_v6 = vmul.f32 0.001953125, %v460_v5  ;;  %609 = vst.msk [vmem:[%s979_s8] sm:$0xff] %vm608_vm2, %v460_v5 }
 0x169   : > { %v504_v7 = vsub.f32 %v879_v13, %v496_v6  ;;  %v505_v8 = vsub.f32 %v883_v15, %v496_v6  ;;  %v506_v9 = vsub.f32 %v881_v14, %v496_v6  ;;  %v507_v11 = vsub.f32 %v885_v16, %v496_v6 }
 0x16a   : > { %v465_v10 = vpop.xlane.xlu0 %464 }
 0x16b   : > { %v497_v12 = vmul.f32 0.001953125, %v465_v10  ;;  %610 = vst.msk [vmem:[%s979_s8 + $0x8] sm:$0xff] %vm608_vm2, %v465_v10  ;;  %v536_v17 = vmul.f32 %v504_v7, %v504_v7  ;;  %v537_v20 = vmul.f32 %v505_v8, %v505_v8  ;;  %v538_v23 = vmul.f32 %v506_v9, %v506_v9 }
 0x16c   : > { %v539_v31 = vmul.f32 %v507_v11, %v507_v11 }
 0x16d   : > { %v568_v24 = vadd.f32 %v537_v20, %v536_v17  ;;  %v508_v27 = vsub.f32 %v889_v18, %v497_v12  ;;  %v509_v30 = vsub.f32 %v894_v21, %v497_v12  ;;  %v510_v13 = vsub.f32 %v891_v19, %v497_v12 }
 0x16e   : > { %v470_v15 = vpop.xlane.xlu1 %469  ;;  %v511_v14 = vsub.f32 %v896_v22, %v497_v12 }
 0x16f   : > { %v498_v34 = vmul.f32 0.001953125, %v470_v15  ;;  %611 = vst.msk [vmem:[%s979_s8 + $0x10] sm:$0xff] %vm608_vm2, %v470_v15  ;;  %v569_v16 = vadd.f32 %v568_v24, %v538_v23  ;;  %v540_v37 = vmul.f32 %v508_v27, %v508_v27  ;;  %v541_v38 = vmul.f32 %v509_v30, %v509_v30 }
 0x170   : > { %v542_v41 = vmul.f32 %v510_v13, %v510_v13  ;;  %v543_v19 = vmul.f32 %v511_v14, %v511_v14 }
 0x171   : > { %v570_v44 = vadd.f32 %v569_v16, %v539_v31  ;;  %v573_v45 = vadd.f32 %v541_v38, %v540_v37  ;;  %v512_v18 = vsub.f32 %v901_v25, %v498_v34  ;;  %v513_v21 = vsub.f32 %v906_v28, %v498_v34 }
 0x172   : > { %v475_v48 = vpop.xlane.xlu1 %474  ;;  %v514_v51 = vsub.f32 %v903_v26, %v498_v34  ;;  %v515_v22 = vsub.f32 %v908_v29, %v498_v34 }
 0x173   : > { %v499_v52 = vmul.f32 0.001953125, %v475_v48  ;;  %612 = vst.msk [vmem:[%s979_s8 + $0x18] sm:$0xff] %vm608_vm2, %v475_v48  ;;  %571 = vadd.xlane.f32.xlu0 %v570_v44  ;;  %v574_v55 = vadd.f32 %v573_v45, %v542_v41  ;;  %v544_v58 = vmul.f32 %v512_v18, %v512_v18  ;;  %v545_v59 = vmul.f32 %v513_v21, %v513_v21 }
 0x174   : > { %v546_v61 = vmul.f32 %v514_v51, %v514_v51  ;;  %v547_v4 = vmul.f32 %v515_v22, %v515_v22 }
 0x175   : > { %v575_v0 = vadd.f32 %v574_v55, %v543_v19  ;;  %v578_v1 = vadd.f32 %v545_v59, %v544_v58  ;;  %v516_v25 = vsub.f32 %v913_v32, %v499_v52  ;;  %v517_v28 = vsub.f32 %v918_v35, %v499_v52 }
 0x176   : > { %v480_v2 = vpop.xlane.xlu0 %479  ;;  %v518_v26 = vsub.f32 %v915_v33, %v499_v52  ;;  %v519_v29 = vsub.f32 %v920_v36, %v499_v52 }
 0x177   : > { %v500_v5 = vmul.f32 0.001953125, %v480_v2  ;;  %613 = vst.msk [vmem:[%s979_s8 + $0x20] sm:$0xff] %vm608_vm2, %v480_v2  ;;  %576 = vadd.xlane.f32.xlu1 %v575_v0  ;;  %v579_v6 = vadd.f32 %v578_v1, %v546_v61  ;;  %v548_v7 = vmul.f32 %v516_v25, %v516_v25  ;;  %v549_v8 = vmul.f32 %v517_v28, %v517_v28 }
 0x178   : > { %v550_v9 = vmul.f32 %v518_v26, %v518_v26  ;;  %v551_v17 = vmul.f32 %v519_v29, %v519_v29 }
 0x179   : > { %v580_v10 = vadd.f32 %v579_v6, %v547_v4  ;;  %v583_v11 = vadd.f32 %v549_v8, %v548_v7  ;;  %v520_v32 = vsub.f32 %v925_v39, %v500_v5  ;;  %v521_v35 = vsub.f32 %v930_v42, %v500_v5 }
 0x17a   : > { %v485_v12 = vpop.xlane.xlu1 %484  ;;  %v522_v33 = vsub.f32 %v927_v40, %v500_v5  ;;  %v523_v36 = vsub.f32 %v932_v43, %v500_v5 }
 0x17b   : > { %v501_v20 = vmul.f32 0.001953125, %v485_v12  ;;  %614 = vst.msk [vmem:[%s979_s8 + $0x28] sm:$0xff] %vm608_vm2, %v485_v12  ;;  %581 = vadd.xlane.f32.xlu0 %v580_v10  ;;  %v584_v23 = vadd.f32 %v583_v11, %v550_v9  ;;  %v552_v24 = vmul.f32 %v520_v32, %v520_v32  ;;  %v553_v27 = vmul.f32 %v521_v35, %v521_v35 }
 0x17c   : > { %v554_v30 = vmul.f32 %v522_v33, %v522_v33  ;;  %v555_v14 = vmul.f32 %v523_v36, %v523_v36 }
 0x17d   : > { %v585_v13 = vadd.f32 %v584_v23, %v551_v17  ;;  %v588_v15 = vadd.f32 %v553_v27, %v552_v24  ;;  %v524_v39 = vsub.f32 %v937_v46, %v501_v20  ;;  %v525_v42 = vsub.f32 %v942_v49, %v501_v20 }
 0x17e   : > { %v490_v31 = vpop.xlane.xlu0 %489  ;;  %v526_v40 = vsub.f32 %v939_v47, %v501_v20  ;;  %v527_v43 = vsub.f32 %v944_v50, %v501_v20 }
 0x17f   : > { %v502_v34 = vmul.f32 0.001953125, %v490_v31  ;;  %615 = vst.msk [vmem:[%s979_s8 + $0x30] sm:$0xff] %vm608_vm2, %v490_v31  ;;  %586 = vadd.xlane.f32.xlu1 %v585_v13  ;;  %v589_v16 = vadd.f32 %v588_v15, %v554_v30  ;;  %v556_v37 = vmul.f32 %v524_v39, %v524_v39  ;;  %v557_v38 = vmul.f32 %v525_v42, %v525_v42 }
 0x180   : > { %v558_v41 = vmul.f32 %v526_v40, %v526_v40  ;;  %v559_v21 = vmul.f32 %v527_v43, %v527_v43 }
 0x181   : > { %v590_v44 = vadd.f32 %v589_v16, %v555_v14  ;;  %v593_v45 = vadd.f32 %v557_v38, %v556_v37  ;;  %v528_v46 = vsub.f32 %v949_v53, %v502_v34  ;;  %v529_v49 = vsub.f32 %v954_v56, %v502_v34 }
 0x182   : > { %v495_v18 = vpop.xlane.xlu1 %494  ;;  %v530_v47 = vsub.f32 %v951_v54, %v502_v34  ;;  %v531_v50 = vsub.f32 %v956_v57, %v502_v34 }
 0x183   : > { %v503_v48 = vmul.f32 0.001953125, %v495_v18  ;;  %616 = vst.msk [vmem:[%s979_s8 + $0x38] sm:$0xff] %vm608_vm2, %v495_v18  ;;  %591 = vadd.xlane.f32.xlu0 %v590_v44  ;;  %v594_v19 = vadd.f32 %v593_v45, %v558_v41  ;;  %v560_v51 = vmul.f32 %v528_v46, %v528_v46  ;;  %v561_v22 = vmul.f32 %v529_v49, %v529_v49 }
 0x184   : > { %v562_v52 = vmul.f32 %v530_v47, %v530_v47  ;;  %v563_v59 = vmul.f32 %v531_v50, %v531_v50 }
 0x185   : > { %v595_v55 = vadd.f32 %v594_v19, %v559_v21  ;;  %v598_v58 = vadd.f32 %v561_v22, %v560_v51  ;;  %v532_v53 = vsub.f32 %v961_v60, %v503_v48  ;;  %v533_v56 = vsub.f32 %v964_v62, %v503_v48 }
 0x186   : > { %v534_v61 = vsub.f32 %v966_v63, %v503_v48  ;;  %v535_v57 = vsub.f32 %v972_v3, %v503_v48 }
 0x187   : > { %596 = vadd.xlane.f32.xlu1 %v595_v55  ;;  %v599_v54 = vadd.f32 %v598_v58, %v562_v52  ;;  %v564_v0 = vmul.f32 %v532_v53, %v532_v53  ;;  %v565_v1 = vmul.f32 %v533_v56, %v533_v56 }
 0x188   : > { %v566_v28 = vmul.f32 %v534_v61, %v534_v61  ;;  %v567_v60 = vmul.f32 %v535_v57, %v535_v57 }
 0x189   : > { %v600_v25 = vadd.f32 %v599_v54, %v563_v59  ;;  %v603_v2 = vadd.f32 %v565_v1, %v564_v0 }
 0x18b   : > { %601 = vadd.xlane.f32.xlu0 %v600_v25  ;;  %v604_v62 = vadd.f32 %v603_v2, %v566_v28 }
 0x18d   : > { %v605_v4 = vadd.f32 %v604_v62, %v567_v60 }
 0x18f   : > { %606 = vadd.xlane.f32.xlu1 %v605_v4 }
 0x1fc   : > { %v572_v63 = vpop.xlane.xlu0 %571 }
 0x1fd   : > { %618 = vst.msk [vmem:[%s979_s8] sm:$0xff] %vm617_vm3, %v572_v63 }
 0x200   : > { %v577_v3 = vpop.xlane.xlu1 %576 }
 0x201   : > { %619 = vst.msk [vmem:[%s979_s8 + $0x8] sm:$0xff] %vm617_vm3, %v577_v3 }
 0x204   : > { %v582_v26 = vpop.xlane.xlu0 %581 }
 0x205   : > { %620 = vst.msk [vmem:[%s979_s8 + $0x10] sm:$0xff] %vm617_vm3, %v582_v26 }
 0x208   : > { %v587_v29 = vpop.xlane.xlu1 %586 }
 0x209   : > { %621 = vst.msk [vmem:[%s979_s8 + $0x18] sm:$0xff] %vm617_vm3, %v587_v29 }
 0x20c   : > { %v592_v5 = vpop.xlane.xlu0 %591 }
 0x20d   : > { %622 = vst.msk [vmem:[%s979_s8 + $0x20] sm:$0xff] %vm617_vm3, %v592_v5 }
 0x210   : > { %v597_v6 = vpop.xlane.xlu1 %596 }
 0x211   : > { %623 = vst.msk [vmem:[%s979_s8 + $0x28] sm:$0xff] %vm617_vm3, %v597_v6 }
 0x214   : > { %v602_v7 = vpop.xlane.xlu0 %601 }
 0x215   : > { %624 = vst.msk [vmem:[%s979_s8 + $0x30] sm:$0xff] %vm617_vm3, %v602_v7 }
 0x218   : > { %v607_v8 = vpop.xlane.xlu1 %606 }
 0x219   : > { %625 = vst.msk [vmem:[%s979_s8 + $0x38] sm:$0xff] %vm617_vm3, %v607_v8 }
 0x21a PF: > { %s12_s11 = sadd.s32 1, %s797_s11   ;;  %s1057_s9 = smov %s793_s10 }
 0x21b   : > { %p9_p5 = scmp.ge.s32.totalorder %s12_s11, 4   ;;  %s1058_s10 = smov %s1060_s12 }
 0x21d   :  { %11 = sbr.rel (!%p9_p5) target bundleno = 2 (0x2), region = 58 }

// kernel: conv_transpose_block.3
= control target key start
LH: loop header
LB: loop body
LE: loop exit
PB: predicated region body
PF: predicated region fallthrough
CT: control target
= control target key end

     0   :  { %s1000_s15 = smov 0   ;;  %s1002_s16 = smov 0   ;;  %s1211_s0 = inlined_call_operand.vmem [shape: f32[2,4,512], index: 0, kind: input, shape index: {}]   ;;  %s1212_s1 = inlined_call_operand.vmem [shape: f32[64,4], index: 1, kind: input, shape index: {}]   ;;  %s1213_s2 = inlined_call_operand.vmem [shape: f32[64,1], index: 2, kind: input, shape index: {}]   ;;  %s1214_s3 = inlined_call_operand.vmem [shape: f32[64,1], index: 3, kind: input, shape index: {}]   ;;  %s1215_s4 = inlined_call_operand.vmem [shape: f32[2,64,512], index: 4, kind: output, shape index: {}]  }
   0x1   :  { %s1004_s17 = smov 0  }
   0x2 LB: > { %s26_s18 = sadd.s32 1, %s967_s16  ;;  %p890_p0 = scmp.ge.s32.totalorder %s971_s17, 1  ;;  %s971_s17 = sphi %s1004_s17, %s14_s17   ;;  %s967_s16 = sphi %s1002_s16, %s1217_s16   ;;  %s963_s15 = sphi %s1000_s15, %s1216_s15  }
   0x3   : > { %p28_p1 = scmp.ge.s32.totalorder %s26_s18, 2  ;;  %p183_p2 = scmp.lt.s32.totalorder %s971_s17, 3 }
   0x5   : > { %s1219_s18 = smov (%p28_p1, %s26_s18), 0  ;;  %p184_p3 = pnand %p890_p0, %p183_p2 }
   0x6   : > { %p218_p4 = scmp.lt.s32.totalorder (!%p184_p3), %s963_s15, 1 }
   0x7   : > { %187 = sbr.rel (%p184_p3) target bundleno = 259 (0x103), region = 36 }
   0xc   : > { %v973_v0 = vmov 0.0   ;;  %s1221_s15 = smov (!%p218_p4, %s963_s15), 1  ;;  %v974_v1 = vmov 0   ;;  %v513_v2 = vld [vmem:[%s1213_s2 + $0x10] sm:$0xff]  ;;  %v511_v3 = vld [vmem:[%s1213_s2] sm:$0xff]  ;;  %v514_v4 = vld [vmem:[%s1213_s2 + $0x18] sm:$0xff] }
   0xd   : > { %349 = vmatprep.mubr.f32.mxu0 %v973_v0  ;;  %462 = vmatprep.mubr.f32.mxu1 %v973_v0  ;;  %s917_s23 = sshll.u32 %s1221_s15, 4  ;;  %v512_v5 = vld [vmem:[%s1213_s2 + $0x8] sm:$0xff]  ;;  %vm276_vm0 = vcmask 1043456   ;;  %v239_v10 = vld [vmem:[%s1212_s1] sm:$0xff]  ;;  %vm251_vm1 = vcmask 31744   ;;  %v518_v14 = vld [vmem:[%s1213_s2 + $0x38] sm:$0xff] }
   0xe   : > { %946 = vset.pattern.permute.xlu1 %v974_v1  ;;  %945 = vset.pattern.permute.xlu0 %v974_v1  ;;  %s225_s26 = scalar_lea.vmem %s1211_s0, %s917_s23  ;;  %v516_v11 = vld [vmem:[%s1213_s2 + $0x28] sm:$0xff]  ;;  %v515_v12 = vld [vmem:[%s1213_s2 + $0x20] sm:$0xff]  ;;  %v517_v15 = vld [vmem:[%s1213_s2 + $0x30] sm:$0xff]  ;;  %s918_s27 = sshll.u32 %s1221_s15, 8 }
   0xf   : > { %531 = vperm.xlu1 %946, %v513_v2   ;;  %521 = vperm.xlu0 %945, %v511_v3   ;;  %v237_v6 = vld [vmem:[%s225_s26] sm:$0xff]  ;;  %v238_v7 = vld [vmem:[%s225_s26 + $0x8] sm:$0xff]  ;;  %v241_v16 = vld [vmem:[%s1212_s1 + $0x10] sm:$0xff]  ;;  %s1144_s30 = scalar_lea.vmem %s1215_s4, %s918_s27 }
  0x10   : > { %v249_v8 = vcombine.high %v237_v6, %v237_v6  ;;  %v250_v9 = vcombine.high %v238_v7, %v238_v7  ;;  %v240_v13 = vld [vmem:[%s1212_s1 + $0x8] sm:$0xff]  ;;  %v591_v18 = vld [vmem:[%s1214_s3] sm:$0xff]  ;;  %v242_v19 = vld [vmem:[%s1212_s1 + $0x18] sm:$0xff] }
  0x11   : > { %v592_v17 = vld [vmem:[%s1214_s3 + $0x8] sm:$0xff]  ;;  %v594_v20 = vld [vmem:[%s1214_s3 + $0x18] sm:$0xff]  ;;  %v593_v21 = vld [vmem:[%s1214_s3 + $0x10] sm:$0xff] }
  0x12   : > { %895 = vmatprep.subr.msk.mxu0 %vm276_vm0, %v249_v8  ;;  %905 = vmatprep.subr.msk.mxu1 %vm276_vm0, %v250_v9  ;;  %v243_v22 = vld [vmem:[%s1212_s1 + $0x20] sm:$0xff]  ;;  %v596_v23 = vld [vmem:[%s1214_s3 + $0x28] sm:$0xff]  ;;  %v598_v26 = vld [vmem:[%s1214_s3 + $0x38] sm:$0xff] }
  0x13   : > { %536 = vperm.xlu1 %946, %v514_v4   ;;  %526 = vperm.xlu0 %945, %v512_v5   ;;  %v595_v24 = vld [vmem:[%s1214_s3 + $0x20] sm:$0xff]  ;;  %v244_v25 = vld [vmem:[%s1212_s1 + $0x28] sm:$0xff]  ;;  %v597_v27 = vld [vmem:[%s1214_s3 + $0x30] sm:$0xff] }
  0x14   : > { %896 = vmatpush1.msk.msra.mxu0 %vm276_vm0, %v237_v6  ;;  %906 = vmatpush1.msk.msra.mxu1 %vm276_vm0, %v238_v7  ;;  %v245_v28 = vld [vmem:[%s1212_s1 + $0x30] sm:$0xff]  ;;  %v246_v29 = vld [vmem:[%s1212_s1 + $0x38] sm:$0xff] }
  0x15   : > { %897 = vmatmul.mubr.msk.f32.vlgmr.msra.gmra.mxu0 %vm251_vm1, %v239_v10  ;;  %907 = vmatmul.mubr.msk.f32.vlgmr.msra.gmra.mxu1 %vm251_vm1, %v239_v10 }
  0x16   : > { %355 = vmatprep.mubr.f32.mxu0 %v973_v0  ;;  %468 = vmatprep.mubr.f32.mxu1 %v973_v0 }
  0x17   : > { %546 = vperm.xlu1 %946, %v516_v11   ;;  %541 = vperm.xlu0 %945, %v515_v12  }
  0x19   : > { %898 = vmatmul.mubr.msk.f32.gmra.mxu0 %vm251_vm1, %v240_v13  ;;  %908 = vmatmul.mubr.msk.f32.gmra.mxu1 %vm251_vm1, %v240_v13 }
  0x1a   : > { %361 = vmatprep.mubr.f32.mxu0 %v973_v0  ;;  %474 = vmatprep.mubr.f32.mxu1 %v973_v0 }
  0x1b   : > { %556 = vperm.xlu1 %946, %v518_v14   ;;  %551 = vperm.xlu0 %945, %v517_v15  }
  0x1d   : > { %899 = vmatmul.mubr.msk.f32.gmra.mxu0 %vm251_vm1, %v241_v16  ;;  %909 = vmatmul.mubr.msk.f32.gmra.mxu1 %vm251_vm1, %v241_v16 }
  0x1e   : > { %367 = vmatprep.mubr.f32.mxu0 %v973_v0  ;;  %480 = vmatprep.mubr.f32.mxu1 %v973_v0 }
  0x1f   : > { %606 = vperm.xlu1 %946, %v592_v17   ;;  %601 = vperm.xlu0 %945, %v591_v18  }
  0x21   : > { %900 = vmatmul.mubr.msk.f32.gmra.mxu0 %vm251_vm1, %v242_v19  ;;  %910 = vmatmul.mubr.msk.f32.gmra.mxu1 %vm251_vm1, %v242_v19 }
  0x22   : > { %373 = vmatprep.mubr.f32.mxu0 %v973_v0  ;;  %486 = vmatprep.mubr.f32.mxu1 %v973_v0 }
  0x23   : > { %616 = vperm.xlu1 %946, %v594_v20   ;;  %611 = vperm.xlu0 %945, %v593_v21  }
  0x25   : > { %901 = vmatmul.mubr.msk.f32.gmra.mxu0 %vm251_vm1, %v243_v22  ;;  %911 = vmatmul.mubr.msk.f32.gmra.mxu1 %vm251_vm1, %v243_v22 }
  0x26   : > { %379 = vmatprep.mubr.f32.mxu0 %v973_v0  ;;  %492 = vmatprep.mubr.f32.mxu1 %v973_v0 }
  0x27   : > { %626 = vperm.xlu1 %946, %v596_v23   ;;  %621 = vperm.xlu0 %945, %v595_v24  }
  0x29   : > { %902 = vmatmul.mubr.msk.f32.gmra.mxu0 %vm251_vm1, %v244_v25  ;;  %912 = vmatmul.mubr.msk.f32.gmra.mxu1 %vm251_vm1, %v244_v25 }
  0x2a   : > { %385 = vmatprep.mubr.f32.mxu0 %v973_v0  ;;  %498 = vmatprep.mubr.f32.mxu1 %v973_v0 }
  0x2b   : > { %636 = vperm.xlu1 %946, %v598_v26   ;;  %631 = vperm.xlu0 %945, %v597_v27  }
  0x2d   : > { %903 = vmatmul.mubr.msk.f32.gmra.mxu0 %vm251_vm1, %v245_v28  ;;  %913 = vmatmul.mubr.msk.f32.gmra.mxu1 %vm251_vm1, %v245_v28 }
  0x2e   : > { %391 = vmatprep.mubr.f32.mxu0 %v973_v0  ;;  %504 = vmatprep.mubr.f32.mxu1 %v973_v0 }
  0x31   : > { %904 = vmatmul.mubr.msk.f32.gmra.mxu0 %vm251_vm1, %v246_v29  ;;  %914 = vmatmul.mubr.msk.f32.gmra.mxu1 %vm251_vm1, %v246_v29 }
  0x8a   : > { %v522_v30 = vpop.permute.xlu0 %521  ;;  %v1128_v31 = vpop.permute.xlu1 %531 }
  0x8e   : > { %v527_v32 = vpop.permute.xlu0 %526  ;;  %v1130_v33 = vpop.permute.xlu1 %536 }
  0x92   : > { %v1132_v34 = vpop.permute.xlu0 %541  ;;  %v1134_v35 = vpop.permute.xlu1 %546 }
  0x96   : > { %v1136_v36 = vpop.permute.xlu0 %551  ;;  %v1138_v39 = vpop.permute.xlu1 %556 }
  0x9a   : > { %v602_v40 = vpop.permute.xlu0 %601  ;;  %v607_v59 = vpop.permute.xlu1 %606 }
  0x9e   : > { %v612_v14 = vpop.permute.xlu0 %611 }
  0xd5   : > { %v351_v37 = vpop.f32.mrf.mxu0  ;;  %v464_v38 = vpop.f32.mrf.mxu1 }
  0xd6   : > { %v559_v41 = vmul.f32 %v522_v30, %v351_v37  ;;  %v561_v42 = vmul.f32 %v522_v30, %v464_v38 }
  0xd7   : > { %v353_v43 = vpop.f32.mrf.mxu0  ;;  %v466_v44 = vpop.f32.mrf.mxu1 }
  0xd8   : > { %v639_v45 = vadd.f32 %v602_v40, %v559_v41  ;;  %v641_v46 = vadd.f32 %v602_v40, %v561_v42  ;;  %v560_v47 = vmul.f32 %v522_v30, %v353_v43  ;;  %v562_v48 = vmul.f32 %v522_v30, %v466_v44 }
  0xd9   : > { %v357_v49 = vpop.f32.mrf.mxu0  ;;  %v470_v50 = vpop.f32.mrf.mxu1 }
  0xda   : > { %vm671_vm2 = vcmp.ge.f32.partialorder %v639_v45, 0.0  ;;  %v703_v51 = vmul.f32 0.01, %v639_v45  ;;  %vm673_vm3 = vcmp.ge.f32.partialorder %v641_v46, 0.0  ;;  %v705_v52 = vmul.f32 0.01, %v641_v46 }
  0xdb   : > { %v640_v53 = vadd.f32 %v602_v40, %v560_v47  ;;  %v642_v54 = vadd.f32 %v602_v40, %v562_v48  ;;  %v563_v55 = vmul.f32 %v527_v32, %v357_v49  ;;  %v565_v56 = vmul.f32 %v527_v32, %v470_v50  ;;  %v359_v57 = vpop.f32.mrf.mxu0  ;;  %v472_v58 = vpop.f32.mrf.mxu1 }
  0xdc   : > { %v735_v60 = vsel %vm671_vm2, %v639_v45, %v703_v51  ;;  %v737_v61 = vsel %vm673_vm3, %v641_v46, %v705_v52  ;;  %v564_v62 = vmul.f32 %v527_v32, %v359_v57  ;;  %v566_v63 = vmul.f32 %v527_v32, %v472_v58  ;;  %v617_v45 = vpop.permute.xlu1 %616 }
  0xdd   : > { %767 = vst [vmem:[%s1144_s30] sm:$0xff] %v735_v60  ;;  %769 = vst [vmem:[%s1144_s30 + $0x10] sm:$0xff] %v737_v61  ;;  %vm672_vm4 = vcmp.ge.f32.partialorder %v640_v53, 0.0  ;;  %v704_v0 = vmul.f32 0.01, %v640_v53  ;;  %vm674_vm5 = vcmp.ge.f32.partialorder %v642_v54, 0.0  ;;  %v363_v2 = vpop.f32.mrf.mxu0  ;;  %v476_v3 = vpop.f32.mrf.mxu1  ;;  %v643_v4 = vadd.f32 %v607_v59, %v563_v55 }
  0xde   : > { %v706_v1 = vmul.f32 0.01, %v642_v54  ;;  %v645_v5 = vadd.f32 %v607_v59, %v565_v56  ;;  %v644_v6 = vadd.f32 %v607_v59, %v564_v62  ;;  %v646_v7 = vadd.f32 %v607_v59, %v566_v63  ;;  %v622_v62 = vpop.permute.xlu0 %621 }
  0xdf   : > { %v736_v8 = vsel %vm672_vm4, %v640_v53, %v704_v0  ;;  %v567_v10 = vmul.f32 %v1128_v31, %v363_v2  ;;  %v569_v11 = vmul.f32 %v1128_v31, %v476_v3  ;;  %v365_v12 = vpop.f32.mrf.mxu0  ;;  %v478_v13 = vpop.f32.mrf.mxu1  ;;  %vm675_vm6 = vcmp.ge.f32.partialorder %v643_v4, 0.0 }
  0xe0   : > { %v738_v9 = vsel %vm674_vm5, %v642_v54, %v706_v1  ;;  %768 = vst [vmem:[%s1144_s30 + $0x8] sm:$0xff] %v736_v8  ;;  %v707_v15 = vmul.f32 0.01, %v643_v4  ;;  %vm677_vm7 = vcmp.ge.f32.partialorder %v645_v5, 0.0  ;;  %v709_v16 = vmul.f32 0.01, %v645_v5 }
  0xe1   : > { %770 = vst [vmem:[%s1144_s30 + $0x18] sm:$0xff] %v738_v9  ;;  %vm676_vm8 = vcmp.ge.f32.partialorder %v644_v6, 0.0  ;;  %v708_v17 = vmul.f32 0.01, %v644_v6  ;;  %vm678_vm9 = vcmp.ge.f32.partialorder %v646_v7, 0.0  ;;  %v369_v19 = vpop.f32.mrf.mxu0  ;;  %v482_v20 = vpop.f32.mrf.mxu1  ;;  %v647_v23 = vadd.f32 %v612_v14, %v567_v10 }
  0xe2   : > { %v710_v18 = vmul.f32 0.01, %v646_v7  ;;  %v739_v21 = vsel %vm675_vm6, %v643_v4, %v707_v15  ;;  %v741_v22 = vsel %vm677_vm7, %v645_v5, %v709_v16  ;;  %v649_v24 = vadd.f32 %v612_v14, %v569_v11 }
  0xe3   : > { %771 = vst [vmem:[%s1144_s30 + $0x20] sm:$0xff] %v739_v21  ;;  %773 = vst [vmem:[%s1144_s30 + $0x30] sm:$0xff] %v741_v22  ;;  %v740_v25 = vsel %vm676_vm8, %v644_v6, %v708_v17  ;;  %v568_v27 = vmul.f32 %v1128_v31, %v365_v12  ;;  %v570_v28 = vmul.f32 %v1128_v31, %v478_v13  ;;  %v371_v29 = vpop.f32.mrf.mxu0  ;;  %v484_v30 = vpop.f32.mrf.mxu1  ;;  %vm679_vm10 = vcmp.ge.f32.partialorder %v647_v23, 0.0 }
  0xe4   : > { %v742_v26 = vsel %vm678_vm9, %v646_v7, %v710_v18  ;;  %772 = vst [vmem:[%s1144_s30 + $0x28] sm:$0xff] %v740_v25  ;;  %v711_v32 = vmul.f32 0.01, %v647_v23  ;;  %vm681_vm11 = vcmp.ge.f32.partialorder %v649_v24, 0.0  ;;  %v713_v37 = vmul.f32 0.01, %v649_v24 }
  0xe5   : > { %774 = vst [vmem:[%s1144_s30 + $0x38] sm:$0xff] %v742_v26  ;;  %v648_v38 = vadd.f32 %v612_v14, %v568_v27  ;;  %v650_v40 = vadd.f32 %v612_v14, %v570_v28  ;;  %v571_v41 = vmul.f32 %v1130_v33, %v369_v19  ;;  %v573_v42 = vmul.f32 %v1130_v33, %v482_v20  ;;  %v375_v43 = vpop.f32.mrf.mxu0  ;;  %v488_v44 = vpop.f32.mrf.mxu1 }
  0xe6   : > { %v743_v31 = vsel %vm679_vm10, %v647_v23, %v711_v32  ;;  %v745_v46 = vsel %vm681_vm11, %v649_v24, %v713_v37  ;;  %v572_v47 = vmul.f32 %v1130_v33, %v371_v29  ;;  %v574_v48 = vmul.f32 %v1130_v33, %v484_v30  ;;  %v627_v26 = vpop.permute.xlu1 %626 }
  0xe7   : > { %775 = vst [vmem:[%s1144_s30 + $0x40] sm:$0xff] %v743_v31  ;;  %777 = vst [vmem:[%s1144_s30 + $0x50] sm:$0xff] %v745_v46  ;;  %vm680_vm12 = vcmp.ge.f32.partialorder %v648_v38, 0.0  ;;  %v712_v49 = vmul.f32 0.01, %v648_v38  ;;  %vm682_vm13 = vcmp.ge.f32.partialorder %v650_v40, 0.0  ;;  %v377_v51 = vpop.f32.mrf.mxu0  ;;  %v490_v52 = vpop.f32.mrf.mxu1  ;;  %v651_v53 = vadd.f32 %v617_v45, %v571_v41 }
  0xe8   : > { %v714_v50 = vmul.f32 0.01, %v650_v40  ;;  %v653_v54 = vadd.f32 %v617_v45, %v573_v42  ;;  %v652_v55 = vadd.f32 %v617_v45, %v572_v47  ;;  %v654_v56 = vadd.f32 %v617_v45, %v574_v48  ;;  %v632_v31 = vpop.permute.xlu0 %631 }
  0xe9   : > { %v744_v57 = vsel %vm680_vm12, %v648_v38, %v712_v49  ;;  %v575_v59 = vmul.f32 %v1132_v34, %v375_v43  ;;  %v577_v33 = vmul.f32 %v1132_v34, %v488_v44  ;;  %v381_v60 = vpop.f32.mrf.mxu0  ;;  %v494_v61 = vpop.f32.mrf.mxu1  ;;  %vm683_vm14 = vcmp.ge.f32.partialorder %v651_v53, 0.0 }
  0xea   : > { %v746_v58 = vsel %vm682_vm13, %v650_v40, %v714_v50  ;;  %776 = vst [vmem:[%s1144_s30 + $0x48] sm:$0xff] %v744_v57  ;;  %v715_v63 = vmul.f32 0.01, %v651_v53  ;;  %vm685_vm15 = vcmp.ge.f32.partialorder %v653_v54, 0.0  ;;  %v717_v0 = vmul.f32 0.01, %v653_v54 }
  0xeb   : > { %778 = vst [vmem:[%s1144_s30 + $0x58] sm:$0xff] %v746_v58  ;;  %vm684_vm0 = vcmp.ge.f32.partialorder %v652_v55, 0.0  ;;  %v716_v1 = vmul.f32 0.01, %v652_v55  ;;  %vm686_vm1 = vcmp.ge.f32.partialorder %v654_v56, 0.0  ;;  %v383_v3 = vpop.f32.mrf.mxu0  ;;  %v496_v4 = vpop.f32.mrf.mxu1  ;;  %v655_v7 = vadd.f32 %v622_v62, %v575_v59 }
  0xec   : > { %v718_v2 = vmul.f32 0.01, %v654_v56  ;;  %v747_v5 = vsel %vm683_vm14, %v651_v53, %v715_v63  ;;  %v749_v6 = vsel %vm685_vm15, %v653_v54, %v717_v0  ;;  %v657_v8 = vadd.f32 %v622_v62, %v577_v33 }
  0xed   : > { %779 = vst [vmem:[%s1144_s30 + $0x60] sm:$0xff] %v747_v5  ;;  %781 = vst [vmem:[%s1144_s30 + $0x70] sm:$0xff] %v749_v6  ;;  %v748_v9 = vsel %vm684_vm0, %v652_v55, %v716_v1  ;;  %v576_v11 = vmul.f32 %v1132_v34, %v377_v51  ;;  %v578_v12 = vmul.f32 %v1132_v34, %v490_v52  ;;  %v387_v13 = vpop.f32.mrf.mxu0  ;;  %v500_v14 = vpop.f32.mrf.mxu1  ;;  %vm687_vm2 = vcmp.ge.f32.partialorder %v655_v7, 0.0 }
  0xee   : > { %v750_v10 = vsel %vm686_vm1, %v654_v56, %v718_v2  ;;  %780 = vst [vmem:[%s1144_s30 + $0x68] sm:$0xff] %v748_v9  ;;  %v719_v15 = vmul.f32 0.01, %v655_v7  ;;  %vm689_vm3 = vcmp.ge.f32.partialorder %v657_v8, 0.0  ;;  %v721_v16 = vmul.f32 0.01, %v657_v8  ;;  %v637_v2 = vpop.permute.xlu1 %636 }
  0xef   : > { %782 = vst [vmem:[%s1144_s30 + $0x78] sm:$0xff] %v750_v10  ;;  %v656_v17 = vadd.f32 %v622_v62, %v576_v11  ;;  %v658_v18 = vadd.f32 %v622_v62, %v578_v12  ;;  %v579_v19 = vmul.f32 %v1134_v35, %v381_v60  ;;  %v581_v20 = vmul.f32 %v1134_v35, %v494_v61  ;;  %v389_v21 = vpop.f32.mrf.mxu0  ;;  %v502_v22 = vpop.f32.mrf.mxu1 }
  0xf0   : > { %v751_v23 = vsel %vm687_vm2, %v655_v7, %v719_v15  ;;  %v753_v34 = vsel %vm689_vm3, %v657_v8, %v721_v16  ;;  %v580_v24 = vmul.f32 %v1134_v35, %v383_v3  ;;  %v582_v25 = vmul.f32 %v1134_v35, %v496_v4 }
  0xf1   : > { %783 = vst [vmem:[%s1144_s30 + $0x80] sm:$0xff] %v751_v23  ;;  %785 = vst [vmem:[%s1144_s30 + $0x90] sm:$0xff] %v753_v34  ;;  %vm688_vm4 = vcmp.ge.f32.partialorder %v656_v17, 0.0  ;;  %v720_v27 = vmul.f32 0.01, %v656_v17  ;;  %vm690_vm5 = vcmp.ge.f32.partialorder %v658_v18, 0.0  ;;  %v659_v29 = vadd.f32 %v627_v26, %v579_v19  ;;  %v393_v35 = vpop.f32.mrf.mxu0  ;;  %v506_v43 = vpop.f32.mrf.mxu1 }
  0xf2   : > { %v722_v28 = vmul.f32 0.01, %v658_v18  ;;  %v661_v30 = vadd.f32 %v627_v26, %v581_v20  ;;  %v660_v32 = vadd.f32 %v627_v26, %v580_v24  ;;  %v662_v37 = vadd.f32 %v627_v26, %v582_v25 }
  0xf3   : > { %v752_v38 = vsel %vm688_vm4, %v656_v17, %v720_v27  ;;  %v583_v41 = vmul.f32 %v1136_v36, %v387_v13  ;;  %v585_v42 = vmul.f32 %v1136_v36, %v500_v14  ;;  %vm691_vm6 = vcmp.ge.f32.partialorder %v659_v29, 0.0  ;;  %v395_v56 = vpop.f32.mrf.mxu0  ;;  %v508_v57 = vpop.f32.mrf.mxu1 }
  0xf4   : > { %v754_v40 = vsel %vm690_vm5, %v658_v18, %v722_v28  ;;  %784 = vst [vmem:[%s1144_s30 + $0x88] sm:$0xff] %v752_v38  ;;  %v723_v44 = vmul.f32 0.01, %v659_v29  ;;  %vm693_vm7 = vcmp.ge.f32.partialorder %v661_v30, 0.0  ;;  %v725_v45 = vmul.f32 0.01, %v661_v30 }
  0xf5   : > { %786 = vst [vmem:[%s1144_s30 + $0x98] sm:$0xff] %v754_v40  ;;  %vm692_vm8 = vcmp.ge.f32.partialorder %v660_v32, 0.0  ;;  %v724_v46 = vmul.f32 0.01, %v660_v32  ;;  %vm694_vm9 = vcmp.ge.f32.partialorder %v662_v37, 0.0  ;;  %v663_v50 = vadd.f32 %v632_v31, %v583_v41 }
  0xf6   : > { %v726_v47 = vmul.f32 0.01, %v662_v37  ;;  %v755_v48 = vsel %vm691_vm6, %v659_v29, %v723_v44  ;;  %v757_v49 = vsel %vm693_vm7, %v661_v30, %v725_v45  ;;  %v665_v51 = vadd.f32 %v632_v31, %v585_v42 }
  0xf7   : > { %787 = vst [vmem:[%s1144_s30 + $0xa0] sm:$0xff] %v755_v48  ;;  %789 = vst [vmem:[%s1144_s30 + $0xb0] sm:$0xff] %v757_v49  ;;  %v756_v52 = vsel %vm692_vm8, %v660_v32, %v724_v46  ;;  %v584_v54 = vmul.f32 %v1136_v36, %v389_v21  ;;  %v586_v55 = vmul.f32 %v1136_v36, %v502_v22  ;;  %vm695_vm10 = vcmp.ge.f32.partialorder %v663_v50, 0.0 }
  0xf8   : > { %v758_v53 = vsel %vm694_vm9, %v662_v37, %v726_v47  ;;  %788 = vst [vmem:[%s1144_s30 + $0xa8] sm:$0xff] %v756_v52  ;;  %v727_v58 = vmul.f32 0.01, %v663_v50  ;;  %vm697_vm11 = vcmp.ge.f32.partialorder %v665_v51, 0.0  ;;  %v729_v59 = vmul.f32 0.01, %v665_v51 }
  0xf9   : > { %790 = vst [vmem:[%s1144_s30 + $0xb8] sm:$0xff] %v758_v53  ;;  %v664_v33 = vadd.f32 %v632_v31, %v584_v54  ;;  %v666_v60 = vadd.f32 %v632_v31, %v586_v55  ;;  %v587_v61 = vmul.f32 %v1138_v39, %v393_v35  ;;  %v589_v62 = vmul.f32 %v1138_v39, %v506_v43 }
  0xfa   : > { %v759_v63 = vsel %vm695_vm10, %v663_v50, %v727_v58  ;;  %v761_v0 = vsel %vm697_vm11, %v665_v51, %v729_v59  ;;  %v588_v36 = vmul.f32 %v1138_v39, %v395_v56  ;;  %v590_v1 = vmul.f32 %v1138_v39, %v508_v57 }
  0xfb   : > { %791 = vst [vmem:[%s1144_s30 + $0xc0] sm:$0xff] %v759_v63  ;;  %793 = vst [vmem:[%s1144_s30 + $0xd0] sm:$0xff] %v761_v0  ;;  %vm696_vm12 = vcmp.ge.f32.partialorder %v664_v33, 0.0  ;;  %v728_v3 = vmul.f32 0.01, %v664_v33  ;;  %vm698_vm13 = vcmp.ge.f32.partialorder %v666_v60, 0.0  ;;  %v667_v5 = vadd.f32 %v637_v2, %v587_v61 }
  0xfc   : > { %v730_v4 = vmul.f32 0.01, %v666_v60  ;;  %v669_v6 = vadd.f32 %v637_v2, %v589_v62  ;;  %v668_v7 = vadd.f32 %v637_v2, %v588_v36  ;;  %v670_v8 = vadd.f32 %v637_v2, %v590_v1 }
  0xfd   : > { %v760_v9 = vsel %vm696_vm12, %v664_v33, %v728_v3  ;;  %vm699_vm14 = vcmp.ge.f32.partialorder %v667_v5, 0.0  ;;  %v731_v39 = vmul.f32 0.01, %v667_v5 }
  0xfe   : > { %v762_v10 = vsel %vm698_vm13, %v666_v60, %v730_v4  ;;  %792 = vst [vmem:[%s1144_s30 + $0xc8] sm:$0xff] %v760_v9  ;;  %vm701_vm15 = vcmp.ge.f32.partialorder %v669_v6, 0.0  ;;  %v733_v11 = vmul.f32 0.01, %v669_v6  ;;  %vm700_vm0 = vcmp.ge.f32.partialorder %v668_v7, 0.0 }
  0xff   : > { %794 = vst [vmem:[%s1144_s30 + $0xd8] sm:$0xff] %v762_v10  ;;  %v732_v12 = vmul.f32 0.01, %v668_v7  ;;  %vm702_vm1 = vcmp.ge.f32.partialorder %v670_v8, 0.0  ;;  %v734_v13 = vmul.f32 0.01, %v670_v8  ;;  %v763_v14 = vsel %vm699_vm14, %v667_v5, %v731_v39 }
 0x100   : > { %v765_v15 = vsel %vm701_vm15, %v669_v6, %v733_v11  ;;  %795 = vst [vmem:[%s1144_s30 + $0xe0] sm:$0xff] %v763_v14 }
 0x101   : > { %797 = vst [vmem:[%s1144_s30 + $0xf0] sm:$0xff] %v765_v15  ;;  %v764_v16 = vsel %vm700_vm0, %v668_v7, %v732_v12  ;;  %v766_v17 = vsel %vm702_vm1, %v670_v8, %v734_v13 }
 0x102   : > { %796 = vst [vmem:[%s1144_s30 + $0xe8] sm:$0xff] %v764_v16  ;;  %798 = vst [vmem:[%s1144_s30 + $0xf8] sm:$0xff] %v766_v17 }
 0x103 PF: > { %s14_s17 = sadd.s32 1, %s971_s17   ;;  %s1216_s15 = smov %s967_s16 }
 0x104   : > { %p11_p5 = scmp.ge.s32.totalorder %s14_s17, 4   ;;  %s1217_s16 = smov %s1219_s18 }
 0x106   :  { %13 = sbr.rel (!%p11_p5) target bundleno = 2 (0x2), region = 66 }

</bundles_post_ra>
